<compile_context>
chip_gen: v7x
topology: tpu7x:2x2x1
jax: 0.10.0
libtpu: 0.0.40
codegen_flags: <defaults>
</compile_context>

<pallas_src>
import jax
import jax.numpy as jnp
from jax import lax
from jax.experimental import pallas as pl
from jax.experimental.pallas import tpu as pltpu


def _interp_matrix(in_size: int, out_size: int) -> jnp.ndarray:
    """(out_size, in_size) matrix A s.t. A @ v == 1-D bilinear resize of v with
    align_corners=True (PyTorch F.interpolate semantics)."""
    if out_size == 1:
        src = jnp.zeros((1,), jnp.float32)
    else:
        src = jnp.arange(out_size, dtype=jnp.float32) * (in_size - 1) / (out_size - 1)
    i0 = jnp.clip(jnp.floor(src).astype(jnp.int32), 0, in_size - 1)
    i1 = jnp.clip(i0 + 1, 0, in_size - 1)
    frac = src - i0.astype(jnp.float32)
    rows = jnp.arange(out_size)
    A = jnp.zeros((out_size, in_size), jnp.float32)
    A = A.at[rows, i0].add(1.0 - frac)
    A = A.at[rows, i1].add(frac)
    return A


def _deconv_kernel(x_ref, ah3_ref, g2_ref, b_ref, o_ref):
    """One grid step.  All operands are VMEM tiles.

    x_ref  : (M_in, C_in*W)         bf16 lane-dense input rows
    ah3_ref: (K, M_out, M_in)       bf16 row-tap (block-diag) H-upsample slices
    g2_ref : (C_in*W, K*Np)         bf16 fused (W-upsample + kw-shift + C_in mix)
    b_ref  : (1, Np)                f32 bias, repeated per output column (zero-padded)
    o_ref  : (M_out, Np)            f32 lane-dense, padded output tile
    """
    K = ah3_ref.shape[0]
    Np = o_ref.shape[-1]

    # One MXU matmul covers all K row-taps' column work: (M_in,64) @ (64, K*Np).
    t = jnp.dot(x_ref[...], g2_ref[...], preferred_element_type=jnp.float32)
    t = t.astype(x_ref.dtype)  # back to bf16 operands for the second MXU pass

    # Bias folded into the accumulator init (no epilogue add pass).
    acc = jnp.broadcast_to(b_ref[...], o_ref.shape).astype(jnp.float32)
    for kh in range(K):
        acc = acc + jnp.dot(ah3_ref[kh], t[:, kh * Np:(kh + 1) * Np],
                            preferred_element_type=jnp.float32)

    o_ref[...] = acc.astype(o_ref.dtype)


def _num_tensorcores_per_chip() -> int:
    # v7x has 2 TensorCores per chip; v5e / v6e have 1.
    try:
        kind = jax.devices()[0].device_kind.lower()
    except Exception:
        return 1
    return 2 if "v7" in kind else 1


def make_deconv(weight, bias, x_shape):
    """Precompute all weight/shape-dependent operators ONCE and return a jitted
    forward(x) implementing: bilinear x2 upsample (align_corners=True) + valid conv."""
    N, C_in, H, W = x_shape
    C_out, _, K, _ = weight.shape
    H_up, W_up = 2 * H, 2 * W
    H_out, W_out = H_up - K + 1, W_up - K + 1          # stride=1, padding=0
    f32, bf16 = jnp.float32, jnp.bfloat16

    Np = ((C_out * W_out + 127) // 128) * 128          # 240 -> 256: unmasked stores
    H_out_pad = ((H_out + 7) // 8) * 8                 # 30  -> 32 : sublane aligned

    # ---- constant operator matrices -----------------------------------------
    A_h = _interp_matrix(H, H_up)                                       # (H_up, H)
    A_w = _interp_matrix(W, W_up)                                       # (W_up, W)

    # AH3[kh] = A_h[kh:kh+H_out, :], zero-padded to H_out_pad rows.
    AH3 = jnp.zeros((K, H_out_pad, H), f32)
    for kh in range(K):
        AH3 = AH3.at[kh, :H_out, :].set(A_h[kh:kh + H_out])

    # G[kh, c*W_up + (x+kw), o*W_out + x] = weight[o, c, kh, kw]  (kw-shift + C_in mix)
    S_w = (jnp.arange(W_up)[None, :, None]
           == (jnp.arange(W_out)[None, None, :]
               + jnp.arange(K)[:, None, None])).astype(f32)             # (K, W_up, W_out)
    G = jnp.einsum('ochw,wqx->hcqox', weight.astype(f32), S_w)
    G = G.reshape(K, C_in * W_up, C_out * W_out)                        # (K, 128, 240)

    # Fold the W-upsample into the conv operator: G2[kh] = kron(I, A_w^T) @ G[kh].
    A_wb = jnp.kron(jnp.eye(C_in, dtype=f32), A_w.T)                    # (C_in*W, C_in*W_up)
    G2 = jnp.einsum('iu,kuo->kio', A_wb, G)                             # (K, 64, 240)
    G2p = jnp.zeros((K, C_in * W, Np), f32).at[:, :, :C_out * W_out].set(G2)
    G2_cat = jnp.concatenate([G2p[kh] for kh in range(K)], axis=-1)     # (64, K*256)

    b_row = jnp.zeros((1, Np), f32).at[0, :C_out * W_out].set(
        jnp.repeat(bias.astype(f32), W_out))                            # (1, 256)

    # ---- grid strategy: one block per TensorCore ----------------------------
    n_tc = _num_tensorcores_per_chip()
    B = N if (n_tc > 1 and N > 1) else 1       # grid blocks
    nb = N // B                                # batch elements fused per block
    Mi, Mo = nb * H, nb * H_out_pad
    # Block-diagonal AH3 folds `nb` batch elements into one grid step (nb=1 -> AH3).
    AH3_blk = jnp.stack([jnp.kron(jnp.eye(nb, dtype=f32), AH3[kh]) for kh in range(K)])

    # bf16 MXU operands; accumulation stays f32 via preferred_element_type.
    AH3_bf = AH3_blk.astype(bf16)
    G2_bf = G2_cat.astype(bf16)

    flops = int(2 * B * (Mi * (C_in * W) * (K * Np) + K * Mo * Mi * Np))
    bytes_accessed = int(2 * (N * H * C_in * W + AH3_bf.size + G2_bf.size)
                         + 4 * (b_row.size + B * Mo * Np))

    call = pl.pallas_call(
        _deconv_kernel,
        out_shape=jax.ShapeDtypeStruct((B * Mo, Np), f32),
        grid_spec=pltpu.PrefetchScalarGridSpec(
            num_scalar_prefetch=0,
            grid=(B,),
            in_specs=[
                pl.BlockSpec((Mi, C_in * W), lambda n: (n, 0)),
                pl.BlockSpec((K, Mo, Mi), lambda n: (0, 0, 0)),
                pl.BlockSpec((C_in * W, K * Np), lambda n: (0, 0)),
                pl.BlockSpec((1, Np), lambda n: (0, 0)),
            ],
            out_specs=pl.BlockSpec((Mo, Np), lambda n: (n, 0)),
        ),
        compiler_params=pltpu.CompilerParams(
            dimension_semantics=("parallel",) if B > 1 else ("arbitrary",)),
        cost_estimate=pl.CostEstimate(flops=flops, transcendentals=0,
                                      bytes_accessed=bytes_accessed),
    )

    @jax.jit
    def forward(x):
        # NCHW -> lane-dense rows (N*H, C_in*W), bf16 operands.
        x_in = jnp.transpose(x, (0, 2, 1, 3)).reshape(N * H, C_in * W).astype(bf16)
        out = call(x_in, AH3_bf, G2_bf, b_row)                     # (N*H_out_pad, Np)
        # strip row/lane padding, back to NCHW
        out = out.reshape(N, H_out_pad, Np)[:, :H_out, :C_out * W_out]
        out = out.reshape(N, H_out, C_out, W_out).transpose(0, 2, 1, 3)
        return out.astype(x.dtype)

    return forward


if __name__ == "__main__":
    key = jax.random.PRNGKey(0)
    kx, kw, kb = jax.random.split(key, 3)

    N, C_in, H, W = 2, 4, 16, 16
    C_out, K = 8, 3

    x = jax.random.normal(kx, (N, C_in, H, W), jnp.float32)
    # Deterministic synthetic Conv2d params (Kaiming-uniform-style bounds).
    fan_in = C_in * K * K
    bound = 1.0 / (fan_in ** 0.5)
    weight = jax.random.uniform(kw, (C_out, C_in, K, K), jnp.float32, -bound, bound)
    bias = jax.random.uniform(kb, (C_out,), jnp.float32, -bound, bound)

    fwd = make_deconv(weight, bias, x.shape)
    out = jax.block_until_ready(fwd(x))

    # Pure-JAX reference: separable bilinear (align_corners=True) + valid conv (f32).
    A_h = _interp_matrix(H, 2 * H)
    A_w = _interp_matrix(W, 2 * W)
    up_ref = jnp.einsum('ph,nchw,qw->ncpq', A_h, x, A_w)
    ref = lax.conv_general_dilated(
        up_ref, weight, window_strides=(1, 1), padding='VALID',
        dimension_numbers=('NCHW', 'OIHW', 'NCHW')) + bias[None, :, None, None]

    assert out.shape == (N, C_out, 2 * H - K + 1, 2 * W - K + 1)
    # Tolerance relaxed vs the f32 kernel because MXU operands are bf16
    # (accumulation stays f32); see performance review.
    err = float(jnp.max(jnp.abs(out - ref)))
    assert jnp.allclose(out, ref, atol=5e-2, rtol=5e-2), err
    print("KERNEL_OK")
</pallas_src>

<mosaic_0001>
module attributes {stable_mosaic.version = 11 : i64} {
  func.func @_deconv_kernel(%arg0: i32, %arg1: memref<32x64xbf16, #tpu.memory_space<vmem>>, %arg2: memref<3x64x32xbf16, #tpu.memory_space<vmem>>, %arg3: memref<64x768xbf16, #tpu.memory_space<vmem>>, %arg4: memref<1x256xf32, #tpu.memory_space<vmem>>, %arg5: memref<64x256xf32, #tpu.memory_space<vmem>>) attributes {dimension_semantics = [#tpu.dimension_semantics<arbitrary>], iteration_bounds = array<i64: 1>, scalar_prefetch = 0 : i64, scratch_operands = 0 : i64, tpu.core_type = #tpu.core_type<tc>, window_params = [{transform_indices = @transform_0, window_bounds = array<i64: 32, 64>}, {pipeline_mode = #tpu.pipeline_mode<synchronous>, transform_indices = @transform_1, window_bounds = array<i64: 3, 64, 32>}, {pipeline_mode = #tpu.pipeline_mode<synchronous>, transform_indices = @transform_2, window_bounds = array<i64: 64, 768>}, {pipeline_mode = #tpu.pipeline_mode<synchronous>, transform_indices = @transform_3, window_bounds = array<i64: 1, 256>}, {transform_indices = @transform_4, window_bounds = array<i64: 64, 256>}]} {
    %c0 = arith.constant 0 : index
    %c0_0 = arith.constant 0 : index
    %0 = vector.load %arg1[%c0, %c0_0] : memref<32x64xbf16, #tpu.memory_space<vmem>>, vector<32x64xbf16>
    %c0_1 = arith.constant 0 : index
    %c0_2 = arith.constant 0 : index
    %1 = vector.load %arg3[%c0_1, %c0_2] : memref<64x768xbf16, #tpu.memory_space<vmem>>, vector<64x768xbf16>
    %cst = arith.constant dense<0.000000e+00> : vector<32x768xf32>
    %2 = tpu.matmul %0, %1, %cst {dimension_numbers = #tpu.dot_dimension_numbers<[1], [0], [0], [1], [0, 0, 1, 1], [], []>} : vector<32x64xbf16>, vector<64x768xbf16>, vector<32x768xf32> -> vector<32x768xf32>
    %3 = arith.truncf %2 : vector<32x768xf32> to vector<32x768xbf16>
    %c0_3 = arith.constant 0 : index
    %c0_4 = arith.constant 0 : index
    %4 = vector.load %arg4[%c0_3, %c0_4] : memref<1x256xf32, #tpu.memory_space<vmem>>, vector<1x256xf32>
    %5 = vector.shape_cast %4 : vector<1x256xf32> to vector<1x256xf32>
    %6 = vector.broadcast %5 : vector<1x256xf32> to vector<64x256xf32>
    %c0_5 = arith.constant 0 : index
    %c0_6 = arith.constant 0 : index
    %c0_7 = arith.constant 0 : index
    %7 = vector.load %arg2[%c0_5, %c0_6, %c0_7] : memref<3x64x32xbf16, #tpu.memory_space<vmem>>, vector<1x64x32xbf16>
    %8 = vector.shape_cast %7 : vector<1x64x32xbf16> to vector<64x32xbf16>
    %9 = vector.extract_strided_slice %3 {offsets = [0, 0], sizes = [32, 256], strides = [1, 1]} : vector<32x768xbf16> to vector<32x256xbf16>
    %cst_8 = arith.constant dense<0.000000e+00> : vector<64x256xf32>
    %10 = tpu.matmul %8, %9, %cst_8 {dimension_numbers = #tpu.dot_dimension_numbers<[1], [0], [0], [1], [0, 0, 1, 1], [], []>} : vector<64x32xbf16>, vector<32x256xbf16>, vector<64x256xf32> -> vector<64x256xf32>
    %11 = arith.addf %6, %10 : vector<64x256xf32>
    %c1 = arith.constant 1 : index
    %c0_9 = arith.constant 0 : index
    %c0_10 = arith.constant 0 : index
    %12 = vector.load %arg2[%c1, %c0_9, %c0_10] : memref<3x64x32xbf16, #tpu.memory_space<vmem>>, vector<1x64x32xbf16>
    %13 = vector.shape_cast %12 : vector<1x64x32xbf16> to vector<64x32xbf16>
    %14 = vector.extract_strided_slice %3 {offsets = [0, 256], sizes = [32, 256], strides = [1, 1]} : vector<32x768xbf16> to vector<32x256xbf16>
    %cst_11 = arith.constant dense<0.000000e+00> : vector<64x256xf32>
    %15 = tpu.matmul %13, %14, %cst_11 {dimension_numbers = #tpu.dot_dimension_numbers<[1], [0], [0], [1], [0, 0, 1, 1], [], []>} : vector<64x32xbf16>, vector<32x256xbf16>, vector<64x256xf32> -> vector<64x256xf32>
    %16 = arith.addf %11, %15 : vector<64x256xf32>
    %c2 = arith.constant 2 : index
    %c0_12 = arith.constant 0 : index
    %c0_13 = arith.constant 0 : index
    %17 = vector.load %arg2[%c2, %c0_12, %c0_13] : memref<3x64x32xbf16, #tpu.memory_space<vmem>>, vector<1x64x32xbf16>
    %18 = vector.shape_cast %17 : vector<1x64x32xbf16> to vector<64x32xbf16>
    %19 = vector.extract_strided_slice %3 {offsets = [0, 512], sizes = [32, 256], strides = [1, 1]} : vector<32x768xbf16> to vector<32x256xbf16>
    %cst_14 = arith.constant dense<0.000000e+00> : vector<64x256xf32>
    %20 = tpu.matmul %18, %19, %cst_14 {dimension_numbers = #tpu.dot_dimension_numbers<[1], [0], [0], [1], [0, 0, 1, 1], [], []>} : vector<64x32xbf16>, vector<32x256xbf16>, vector<64x256xf32> -> vector<64x256xf32>
    %21 = arith.addf %16, %20 : vector<64x256xf32>
    %c0_15 = arith.constant 0 : index
    %c0_16 = arith.constant 0 : index
    %22 = vector.load %arg5[%c0_15, %c0_16] : memref<64x256xf32, #tpu.memory_space<vmem>>, vector<64x256xf32>
    tpu.vector_store %arg5[%c0_15, %c0_16], %21 {strides = array<i32>} : memref<64x256xf32, #tpu.memory_space<vmem>>, vector<64x256xf32>,
    return
  }
  func.func @transform_0(%arg0: i32) -> (i32, i32) {
    %c0_i32 = arith.constant 0 : i32
    %c0_i32_0 = arith.constant 0 : i32
    return %arg0, %c0_i32 : i32, i32
  }
  func.func @transform_1(%arg0: i32) -> (i32, i32, i32) {
    %c0_i32 = arith.constant 0 : i32
    %c0_i32_0 = arith.constant 0 : i32
    %c0_i32_1 = arith.constant 0 : i32
    %c0_i32_2 = arith.constant 0 : i32
    return %c0_i32, %c0_i32_0, %c0_i32_1 : i32, i32, i32
  }
  func.func @transform_2(%arg0: i32) -> (i32, i32) {
    %c0_i32 = arith.constant 0 : i32
    %c0_i32_0 = arith.constant 0 : i32
    %c0_i32_1 = arith.constant 0 : i32
    return %c0_i32, %c0_i32_0 : i32, i32
  }
  func.func @transform_3(%arg0: i32) -> (i32, i32) {
    %c0_i32 = arith.constant 0 : i32
    %c0_i32_0 = arith.constant 0 : i32
    %c0_i32_1 = arith.constant 0 : i32
    return %c0_i32, %c0_i32_0 : i32, i32
  }
  func.func @transform_4(%arg0: i32) -> (i32, i32) {
    %c0_i32 = arith.constant 0 : i32
    %c0_i32_0 = arith.constant 0 : i32
    return %arg0, %c0_i32 : i32, i32
  }
}

</mosaic_0001>

<bundles_post_ra>
// kernel: forward.1
= control target key start
LH: loop header
LB: loop body
LE: loop exit
PB: predicated region body
PF: predicated region fallthrough
CT: control target
= control target key end

     0   :  { %v951_v1 = vmov 0   ;;  %vm176_vm0 = vcmask 523264   ;;  %vm394_vm1 = vcmask 261120   ;;  %s1178_s2 = inlined_call_operand.vmem [shape: bf16[64,768], index: 2, kind: input, shape index: {}]   ;;  %s1179_s0 = inlined_call_operand.vmem [shape: bf16[32,64], index: 0, kind: input, shape index: {}]   ;;  %s1180_s1 = inlined_call_operand.vmem [shape: bf16[3,64,32], index: 1, kind: input, shape index: {}]   ;;  %s1181_s3 = inlined_call_operand.vmem [shape: f32[1,256], index: 3, kind: input, shape index: {}]   ;;  %s1182_s4 = inlined_call_operand.vmem [shape: f32[64,256], index: 4, kind: output, shape index: {}]  }
   0x1   :  { %v901_v0 = vld [vmem:[%s1178_s2 + $0x4] ss:$24 sps:$4 sm:$0xff]   ;;  %215 = vmatprep.mubr.bf16.mxu0 %v951_v1  ;;  %268 = vmatprep.mubr.bf16.mxu1 %v951_v1  ;;  %v905_v3 = vld [vmem:[%s1178_s2] ss:$24 sps:$4 sm:$0xff]   ;;  %v907_v5 = vld [vmem:[%s1178_s2 + $0x34] ss:$24 sps:$4 sm:$0xff]  }
   0x2   :  { %v903_v2 = vld [vmem:[%s1178_s2 + $0xc] ss:$24 sps:$4 sm:$0xff]   ;;  %183 = vmatprep.subr.bf16.mxu0 %v901_v0  ;;  %v906_v4 = vld [vmem:[%s1178_s2 + $0x8] ss:$24 sps:$4 sm:$0xff]   ;;  %v909_v6 = vld [vmem:[%s1178_s2 + $0x3c] ss:$24 sps:$4 sm:$0xff]  }
   0x3   :  { %236 = vmatprep.subr.bf16.mxu1 %v903_v2  ;;  %184 = vmatpush1.bf16.msra.mxu0 %v905_v3  ;;  %v911_v7 = vld [vmem:[%s1178_s2 + $0x30] ss:$24 sps:$4 sm:$0xff]   ;;  %v913_v9 = vld [vmem:[%s1178_s2 + $0x64] ss:$24 sps:$4 sm:$0xff]   ;;  %v917_v11 = vld [vmem:[%s1178_s2 + $0x60] ss:$24 sps:$4 sm:$0xff]  }
   0x4   :  { %237 = vmatpush1.bf16.msra.mxu1 %v906_v4  ;;  %185 = vmatprep.subr.bf16.mxu0 %v907_v5  ;;  %v912_v8 = vld [vmem:[%s1178_s2 + $0x38] ss:$24 sps:$4 sm:$0xff]   ;;  %v915_v10 = vld [vmem:[%s1178_s2 + $0x6c] ss:$24 sps:$4 sm:$0xff]   ;;  %v918_v12 = vld [vmem:[%s1178_s2 + $0x68] ss:$24 sps:$4 sm:$0xff]  }
   0x5   :  { %238 = vmatprep.subr.bf16.mxu1 %v909_v6  ;;  %v919_v13 = vld [vmem:[%s1178_s2 + $0x94] ss:$24 sps:$4 sm:$0xff]   ;;  %v923_v15 = vld [vmem:[%s1178_s2 + $0x90] ss:$24 sps:$4 sm:$0xff]   ;;  %v925_v18 = vld [vmem:[%s1179_s0] sm:$0xff]  }
   0x6   :  { %v921_v14 = vld [vmem:[%s1178_s2 + $0x9c] ss:$24 sps:$4 sm:$0xff]   ;;  %v924_v16 = vld [vmem:[%s1178_s2 + $0x98] ss:$24 sps:$4 sm:$0xff]   ;;  %v932_v23 = vld [vmem:[%s1179_s0 + $0x8] sm:$0xff]  }
   0x7   :  { %186 = vmatpush1.bf16.msra.mxu0 %v911_v7  ;;  %v928_v17 = vld [vmem:[%s1178_s2 + $0x14] ss:$24 sps:$4 sm:$0xff]   ;;  %v926_v19 = vld [vmem:[%s1178_s2 + $0x10] ss:$24 sps:$4 sm:$0xff]   ;;  %v931_v20 = vld [vmem:[%s1178_s2 + $0x44] ss:$24 sps:$4 sm:$0xff]  }
   0x8   :  { %239 = vmatpush1.bf16.msra.mxu1 %v912_v8  ;;  %187 = vmatprep.subr.bf16.mxu0 %v913_v9  ;;  %v929_v21 = vld [vmem:[%s1178_s2 + $0x40] ss:$24 sps:$4 sm:$0xff]   ;;  %v935_v22 = vld [vmem:[%s1178_s2 + $0x74] ss:$24 sps:$4 sm:$0xff]   ;;  %v933_v24 = vld [vmem:[%s1178_s2 + $0x70] ss:$24 sps:$4 sm:$0xff]  }
   0x9   :  { %240 = vmatprep.subr.bf16.mxu1 %v915_v10  ;;  %v938_v25 = vld [vmem:[%s1178_s2 + $0xa4] ss:$24 sps:$4 sm:$0xff]   ;;  %v936_v26 = vld [vmem:[%s1178_s2 + $0xa0] ss:$24 sps:$4 sm:$0xff]   ;;  %v940_v52 = vld [vmem:[%s1180_s1 + $0x28] sm:$0xff]  }
   0xa   :  { %v939_v51 = vld [vmem:[%s1180_s1] sm:$0xff]   ;;  %v941_v59 = vld [vmem:[%s1180_s1 + $0x8] sm:$0xff]   ;;  %v942_v60 = vld [vmem:[%s1180_s1 + $0x30] sm:$0xff]  }
   0xb   :  { %188 = vmatpush1.bf16.msra.mxu0 %v917_v11  ;;  %v943_v4 = vld [vmem:[%s1180_s1 + $0x10] sm:$0xff]   ;;  %v944_v5 = vld [vmem:[%s1180_s1 + $0x38] sm:$0xff]   ;;  %v946_v7 = vld [vmem:[%s1180_s1 + $0x40] sm:$0xff]  }
   0xc   :  { %241 = vmatpush1.bf16.msra.mxu1 %v918_v12  ;;  %189 = vmatprep.subr.bf16.mxu0 %v919_v13  ;;  %v945_v6 = vld [vmem:[%s1180_s1 + $0x18] sm:$0xff]   ;;  %v947_v8 = vld [vmem:[%s1180_s1 + $0x20] sm:$0xff]   ;;  %v948_v9 = vld [vmem:[%s1180_s1 + $0x48] sm:$0xff]  }
   0xd   :  { %242 = vmatprep.subr.bf16.mxu1 %v921_v14  ;;  %v949_v10 = vld [vmem:[%s1180_s1 + $0x50] sm:$0xff]   ;;  %v950_v11 = vld [vmem:[%s1180_s1 + $0x58] sm:$0xff]  }
   0xf   :  { %190 = vmatpush1.bf16.msra.mxu0 %v923_v15 }
  0x10   :  { %243 = vmatpush1.bf16.msra.mxu1 %v924_v16  ;;  %289 = vmatprep.subr.bf16.mxu0 %v928_v17  ;;  %v356_v16 = vlaneseq }
  0x12   :  { %802 = vmatmul.mubr.msk.bf16.vlgmr.msra.gmra.mrb[0].mxu0 %vm176_vm0, %v925_v18 }
  0x13   :  { %804 = vmatmul.mubr.msk.bf16.vlgmr.msra.gmra.mrb[0].mxu1 %vm176_vm0, %v925_v18  ;;  %290 = vmatpush1.bf16.msra.mxu0 %v926_v19 }
  0x14   :  { %225 = vmatprep.mubr.bf16.mxu0 %v951_v1  ;;  %291 = vmatprep.subr.bf16.mxu0 %v931_v20  ;;  %v357_v20 = vshrl.u32 %v356_v16, 7 }
  0x15   :  { %278 = vmatprep.mubr.bf16.mxu1 %v951_v1 }
  0x17   :  { %292 = vmatpush1.bf16.msra.mxu0 %v929_v21 }
  0x18   :  { %293 = vmatprep.subr.bf16.mxu0 %v935_v22  ;;  %v358_v22 = vsub.s32 0, %v357_v20 }
  0x1a   :  { %803 = vmatmul.mubr.msk.bf16.gmra.mrb[4].mxu0 %vm176_vm0, %v932_v23 }
  0x1b   :  { %805 = vmatmul.mubr.msk.bf16.gmra.mrb[4].mxu1 %vm176_vm0, %v932_v23  ;;  %294 = vmatpush1.bf16.msra.mxu0 %v933_v24 }
  0x1c   :  { %321 = vmatprep.mubr.bf16.mxu0 %v951_v1  ;;  %295 = vmatprep.subr.bf16.mxu0 %v938_v25 }
  0x1d   :  { %579 = vmatprep.mubr.bf16.mxu1 %v951_v1 }
  0x1f   :  { %296 = vmatpush1.bf16.msra.mxu0 %v936_v26 }
  0x22   :  { %806 = vmatmul.mubr.msk.bf16.vlgmr.msra.gmra.mrb[8].mxu0 %vm176_vm0, %v925_v18 }
  0x23   :  { %331 = vmatprep.mubr.bf16.mxu0 %v951_v1 }
  0x2a   :  { %807 = vmatmul.mubr.msk.bf16.gmra.mrb[12].mxu0 %vm176_vm0, %v932_v23  ;;  %v362_v23 = vsub.s32 1, %v357_v20 }
  0x2b   :  { %439 = vmatprep.mubr.bf16.mxu0 %v951_v1 }
  0xe5   :  { %v217_v27 = vpop.f32.mrb[0].mxu0 }
  0xe6   :  { %v270_v28 = vpop.f32.mrb[0].mxu1  ;;  %v219_v29 = vpop.f32.mrb[1].mxu0 }
  0xe7   :  { %v272_v30 = vpop.f32.mrb[1].mxu1  ;;  %v221_v31 = vpop.f32.mrb[2].mxu0 }
  0xe8   :  { %v274_v32 = vpop.f32.mrb[2].mxu1  ;;  %v342_v33 = vpack.c.bf16 %v221_v31, %v217_v27  ;;  %v223_v35 = vpop.f32.mrb[3].mxu0 }
  0xe9   :  { %v344_v34 = vpack.c.bf16 %v274_v32, %v270_v28  ;;  %v276_v36 = vpop.f32.mrb[3].mxu1  ;;  %v343_v37 = vpack.c.bf16 %v223_v35, %v219_v29 }
  0xea   :  { %v345_v38 = vpack.c.bf16 %v276_v36, %v272_v30 }
  0xeb   :  { %407 = vmatprep.subr.bf16.mxu0 %v343_v37 }
  0xec   :  { %848 = vmatprep.subr.bf16.mxu1 %v345_v38  ;;  %408 = vmatpush1.bf16.msra.mxu0 %v342_v33 }
  0xed   :  { %850 = vmatpush1.bf16.msra.mxu1 %v344_v34  ;;  %v227_v39 = vpop.f32.mrb[4].mxu0 }
  0xee   :  { %v280_v40 = vpop.f32.mrb[4].mxu1  ;;  %v229_v41 = vpop.f32.mrb[5].mxu0 }
  0xef   :  { %v282_v42 = vpop.f32.mrb[5].mxu1  ;;  %v231_v43 = vpop.f32.mrb[6].mxu0 }
  0xf0   :  { %v284_v44 = vpop.f32.mrb[6].mxu1  ;;  %v348_v45 = vpack.c.bf16 %v231_v43, %v227_v39  ;;  %v233_v47 = vpop.f32.mrb[7].mxu0 }
  0xf1   :  { %v350_v46 = vpack.c.bf16 %v284_v44, %v280_v40  ;;  %v286_v48 = vpop.f32.mrb[7].mxu1  ;;  %v349_v49 = vpack.c.bf16 %v233_v47, %v229_v41 }
  0xf2   :  { %v351_v50 = vpack.c.bf16 %v286_v48, %v282_v42 }
  0xf3   :  { %409 = vmatprep.subr.bf16.mxu0 %v349_v49 }
  0xf4   :  { %849 = vmatprep.subr.bf16.mxu1 %v351_v50  ;;  %410 = vmatpush1.bf16.msra.mxu0 %v348_v45 }
  0xf5   :  { %851 = vmatpush1.bf16.msra.mxu1 %v350_v46  ;;  %v323_v53 = vpop.f32.mrb[8].mxu0  ;;  %537 = vmatprep.subr.bf16.mxu0 %v345_v38 }
  0xf6   :  { %v325_v54 = vpop.f32.mrb[9].mxu0 }
  0xf7   :  { %v327_v55 = vpop.f32.mrb[10].mxu0  ;;  %812 = vmatmul.mubr.msk.bf16.vlgmr.msra.gmra.mrb[16].mxu0 %vm394_vm1, %v939_v51 }
  0xf8   :  { %829 = vmatmul.mubr.msk.bf16.vlgmr.msra.gmra.mrb[8].mxu1 %vm394_vm1, %v940_v52  ;;  %v346_v56 = vpack.c.bf16 %v327_v55, %v323_v53  ;;  %v329_v57 = vpop.f32.mrb[11].mxu0  ;;  %538 = vmatpush1.bf16.msra.mxu0 %v344_v34 }
  0xf9   :  { %449 = vmatprep.mubr.bf16.mxu0 %v951_v1  ;;  %v347_v58 = vpack.c.bf16 %v329_v57, %v325_v54  ;;  %539 = vmatprep.subr.bf16.mxu0 %v351_v50 }
  0xfa   :  { %589 = vmatprep.mubr.bf16.mxu1 %v951_v1 }
  0xfb   :  { %667 = vmatprep.subr.bf16.mxu1 %v347_v58 }
  0xfc   :  { %540 = vmatpush1.bf16.msra.mxu0 %v350_v46  ;;  %668 = vmatpush1.bf16.msra.mxu1 %v346_v56 }
  0xfd   :  { %v333_v61 = vpop.f32.mrb[12].mxu0 }
  0xfe   :  { %v335_v62 = vpop.f32.mrb[13].mxu0 }
  0xff   :  { %v337_v63 = vpop.f32.mrb[14].mxu0  ;;  %813 = vmatmul.mubr.msk.bf16.gmra.mrb[20].mxu0 %vm394_vm1, %v941_v59 }
 0x100   :  { %830 = vmatmul.mubr.msk.bf16.gmra.mrb[12].mxu1 %vm394_vm1, %v942_v60  ;;  %v352_v0 = vpack.c.bf16 %v337_v63, %v333_v61  ;;  %v339_v2 = vpop.f32.mrb[15].mxu0  ;;  %459 = vmatprep.mubr.bf16.mxu0 %v951_v1 }
 0x101   :  { %599 = vmatprep.mubr.bf16.mxu1 %v951_v1  ;;  %v353_v3 = vpack.c.bf16 %v339_v2, %v335_v62 }
 0x103   :  { %669 = vmatprep.subr.bf16.mxu1 %v353_v3 }
 0x104   :  { %670 = vmatpush1.bf16.msra.mxu1 %v352_v0 }
 0x107   :  { %814 = vmatmul.mubr.msk.bf16.gmra.mrb[24].mxu0 %vm394_vm1, %v943_v4 }
 0x108   :  { %831 = vmatmul.mubr.msk.bf16.gmra.mrb[16].mxu1 %vm394_vm1, %v944_v5  ;;  %469 = vmatprep.mubr.bf16.mxu0 %v951_v1 }
 0x109   :  { %699 = vmatprep.mubr.bf16.mxu1 %v951_v1 }
 0x10f   :  { %815 = vmatmul.mubr.msk.bf16.gmra.mrb[28].mxu0 %vm394_vm1, %v945_v6 }
 0x110   :  { %844 = vmatmul.mubr.msk.bf16.vlgmr.msra.gmra.mrb[20].mxu1 %vm394_vm1, %v946_v7  ;;  %569 = vmatprep.mubr.bf16.mxu0 %v951_v1 }
 0x111   :  { %709 = vmatprep.mubr.bf16.mxu1 %v951_v1 }
 0x117   :  { %828 = vmatmul.mubr.msk.bf16.vlgmr.msra.gmra.mrb[16].mxu0 %vm394_vm1, %v947_v8 }
 0x118   :  { %845 = vmatmul.mubr.msk.bf16.gmra.mrb[8].mxu1 %vm394_vm1, %v948_v9 }
 0x119   :  { %719 = vmatprep.mubr.bf16.mxu1 %v951_v1 }
 0x120   :  { %846 = vmatmul.mubr.msk.bf16.gmra.mrb[12].mxu1 %vm394_vm1, %v949_v10 }
 0x121   :  { %729 = vmatprep.mubr.bf16.mxu1 %v951_v1  ;;  %v354_v1 = vld [vmem:[%s1181_s3] sm:$0x3] }
 0x122   :  { %v359_v30 = vrot.slane %v354_v1, %v358_v22  ;;  %v363_v33 = vrot.slane %v354_v1, %v362_v23 }
 0x128   :  { %847 = vmatmul.mubr.msk.bf16.gmra.mrb[16].mxu1 %vm394_vm1, %v950_v11 }
 0x1d2   :  { %v451_v12 = vpop.f32.mrb[20].mxu0 }
 0x1d3   :  { %v453_v13 = vpop.f32.mrb[21].mxu0  ;;  %v484_v34 = vadd.f32 %v451_v12, %v359_v30 }
 0x1d4   :  { %v455_v14 = vpop.f32.mrb[22].mxu0  ;;  %v485_v35 = vadd.f32 %v453_v13, %v363_v33 }
 0x1d5   :  { %v457_v15 = vpop.f32.mrb[23].mxu0  ;;  %v486_v38 = vadd.f32 %v455_v14, %v359_v30 }
 0x1d6   :  { %v487_v43 = vadd.f32 %v457_v15, %v363_v33 }
 0x1da   :  { %v461_v17 = vpop.f32.mrb[24].mxu0 }
 0x1db   :  { %v463_v18 = vpop.f32.mrb[25].mxu0  ;;  %v488_v58 = vadd.f32 %v461_v17, %v359_v30 }
 0x1dc   :  { %v465_v19 = vpop.f32.mrb[26].mxu0  ;;  %v489_v59 = vadd.f32 %v463_v18, %v363_v33 }
 0x1dd   :  { %v467_v21 = vpop.f32.mrb[27].mxu0  ;;  %v490_v61 = vadd.f32 %v465_v19, %v359_v30 }
 0x1de   :  { %v491_v0 = vadd.f32 %v467_v21, %v363_v33 }
 0x1e2   :  { %v471_v25 = vpop.f32.mrb[28].mxu0 }
 0x1e3   :  { %v701_v24 = vpop.f32.mrb[20].mxu1  ;;  %v473_v27 = vpop.f32.mrb[29].mxu0  ;;  %v492_v7 = vadd.f32 %v471_v25, %v359_v30 }
 0x1e4   :  { %v703_v26 = vpop.f32.mrb[21].mxu1  ;;  %v475_v29 = vpop.f32.mrb[30].mxu0  ;;  %v493_v8 = vadd.f32 %v473_v27, %v363_v33 }
 0x1e5   :  { %v705_v28 = vpop.f32.mrb[22].mxu1  ;;  %v477_v32 = vpop.f32.mrb[31].mxu0  ;;  %v494_v10 = vadd.f32 %v475_v29, %v359_v30 }
 0x1e6   :  { %v707_v31 = vpop.f32.mrb[23].mxu1  ;;  %v495_v13 = vadd.f32 %v477_v32, %v363_v33 }
 0x1ea   :  { %v571_v36 = vpop.f32.mrb[16].mxu0 }
 0x1eb   :  { %v711_v37 = vpop.f32.mrb[8].mxu1  ;;  %v852_v39 = vadd.f32 %v571_v36, %v359_v30  ;;  %v573_v41 = vpop.f32.mrb[17].mxu0 }
 0x1ec   :  { %v861_v40 = vadd.f32 %v711_v37, %v484_v34  ;;  %v713_v42 = vpop.f32.mrb[9].mxu1  ;;  %v854_v44 = vadd.f32 %v573_v41, %v363_v33  ;;  %v575_v46 = vpop.f32.mrb[18].mxu0 }
 0x1ed   :  { %v863_v45 = vadd.f32 %v713_v42, %v485_v35  ;;  %v715_v47 = vpop.f32.mrb[10].mxu1  ;;  %v853_v48 = vadd.f32 %v852_v39, %v701_v24  ;;  %v856_v49 = vadd.f32 %v575_v46, %v359_v30  ;;  %v577_v51 = vpop.f32.mrb[19].mxu0 }
 0x1ee   :  { %760 = vst [vmem:[%s1182_s4 + $0x20] sm:$0xff] %v861_v40  ;;  %v865_v50 = vadd.f32 %v715_v47, %v486_v38  ;;  %v717_v52 = vpop.f32.mrb[11].mxu1  ;;  %v855_v53 = vadd.f32 %v854_v44, %v703_v26  ;;  %v858_v54 = vadd.f32 %v577_v51, %v363_v33 }
 0x1ef   :  { %761 = vst [vmem:[%s1182_s4 + $0x28] sm:$0xff] %v863_v45  ;;  %v867_v55 = vadd.f32 %v717_v52, %v487_v43  ;;  %756 = vst [vmem:[%s1182_s4] sm:$0xff] %v853_v48  ;;  %v857_v56 = vadd.f32 %v856_v49, %v705_v28 }
 0x1f0   :  { %762 = vst [vmem:[%s1182_s4 + $0x30] sm:$0xff] %v865_v50  ;;  %757 = vst [vmem:[%s1182_s4 + $0x8] sm:$0xff] %v855_v53  ;;  %v859_v57 = vadd.f32 %v858_v54, %v707_v31 }
 0x1f1   :  { %763 = vst [vmem:[%s1182_s4 + $0x38] sm:$0xff] %v867_v55  ;;  %758 = vst [vmem:[%s1182_s4 + $0x10] sm:$0xff] %v857_v56 }
 0x1f2   :  { %759 = vst [vmem:[%s1182_s4 + $0x18] sm:$0xff] %v859_v57 }
 0x1f3   :  { %v721_v60 = vpop.f32.mrb[12].mxu1 }
 0x1f4   :  { %v869_v62 = vadd.f32 %v721_v60, %v488_v58  ;;  %v723_v63 = vpop.f32.mrb[13].mxu1 }
 0x1f5   :  { %v871_v2 = vadd.f32 %v723_v63, %v489_v59  ;;  %v725_v3 = vpop.f32.mrb[14].mxu1 }
 0x1f6   :  { %764 = vst [vmem:[%s1182_s4 + $0x40] sm:$0xff] %v869_v62  ;;  %v873_v4 = vadd.f32 %v725_v3, %v490_v61  ;;  %v727_v5 = vpop.f32.mrb[15].mxu1 }
 0x1f7   :  { %765 = vst [vmem:[%s1182_s4 + $0x48] sm:$0xff] %v871_v2  ;;  %v875_v6 = vadd.f32 %v727_v5, %v491_v0 }
 0x1f8   :  { %766 = vst [vmem:[%s1182_s4 + $0x50] sm:$0xff] %v873_v4 }
 0x1f9   :  { %767 = vst [vmem:[%s1182_s4 + $0x58] sm:$0xff] %v875_v6 }
 0x1fb   :  { %v731_v9 = vpop.f32.mrb[16].mxu1 }
 0x1fc   :  { %v877_v11 = vadd.f32 %v731_v9, %v492_v7  ;;  %v733_v12 = vpop.f32.mrb[17].mxu1 }
 0x1fd   :  { %v879_v14 = vadd.f32 %v733_v12, %v493_v8  ;;  %v735_v15 = vpop.f32.mrb[18].mxu1 }
 0x1fe   :  { %768 = vst [vmem:[%s1182_s4 + $0x60] sm:$0xff] %v877_v11  ;;  %v881_v16 = vadd.f32 %v735_v15, %v494_v10  ;;  %v737_v17 = vpop.f32.mrb[19].mxu1 }
 0x1ff   :  { %769 = vst [vmem:[%s1182_s4 + $0x68] sm:$0xff] %v879_v14  ;;  %v883_v18 = vadd.f32 %v737_v17, %v495_v13 }
 0x200   :  { %770 = vst [vmem:[%s1182_s4 + $0x70] sm:$0xff] %v881_v16 }
 0x201   :  { %771 = vst [vmem:[%s1182_s4 + $0x78] sm:$0xff] %v883_v18 }

</bundles_post_ra>
